<compile_context>
chip_gen: v5e
topology: v5e:2x2
jax: 0.10.0
libtpu: 0.0.40
codegen_flags: <defaults>
</compile_context>

<pallas_src>
import jax
import jax.numpy as jnp
import numpy as np
from jax.experimental import pallas as pl
from jax.experimental.pallas import tpu as pltpu

LANE = 128      # vreg lane width (last dim)
SUBLANE = 8     # vreg sublane count (second-minor dim)


def _round_up(x, m):
    return (x + m - 1) // m * m


def mlp_kernel(x_ref, w1_ref, b1_ref, w2_ref, b2_ref, o_ref):
    # TODO(synk): nn.Dropout(p=0.7) is identity in eval mode; training-mode
    # stochastic dropout (pltpu.prng_*) is intentionally not applied here.
    x = x_ref[...]
    # First linear: MXU matmul with f32 accumulation; bias + ReLU in f32.
    h = jnp.dot(x, w1_ref[...], preferred_element_type=jnp.float32) + b1_ref[...]
    h = jnp.maximum(h, 0.0)
    # Second linear: cast activations to the weight dtype (bf16 by default)
    # only as MXU operands; accumulation stays f32.
    y = jnp.dot(h.astype(w2_ref.dtype), w2_ref[...],
                preferred_element_type=jnp.float32) + b2_ref[...]
    o_ref[...] = jax.nn.sigmoid(y).astype(o_ref.dtype)


def _choose_tile_b(b_padded, dp_in, dp_hid, dp_out, mxu_bytes, vmem_budget_bytes):
    """VMEM-aware batch tile (rows). Conservative budget works for the 16 MiB
    scoped default on v5e and leaves plenty of headroom on v6e/v7x."""
    # Resident weights/biases: BlockSpec double-buffers even constant-index
    # blocks, so count them twice.
    fixed = (2 * (dp_in * dp_hid + dp_hid * dp_out) * mxu_bytes
             + 2 * (dp_hid + dp_out) * 4)
    # Per-row cost: double-buffered x tile + double-buffered f32 output tile
    # + f32 intermediates (h, y) + bf16 copy of h for the second matmul.
    per_row = (2 * dp_in * mxu_bytes + 2 * dp_out * 4
               + 4 * (dp_hid + dp_out) + dp_hid * mxu_bytes)
    avail = max(vmem_budget_bytes - fixed, SUBLANE * per_row)
    tile = min(512, avail // per_row)          # 512-row cap
    if b_padded >= 2 * SUBLANE:
        # Ensure >=2 parallel grid steps so both v7x TensorCores get tiles.
        tile = min(tile, _round_up((b_padded + 1) // 2, SUBLANE))
    return max(SUBLANE, (int(tile) // SUBLANE) * SUBLANE)


def mlp_forward(x, w1, b1, w2, b2, *, tile_b=None, mxu_dtype=jnp.bfloat16,
                vmem_budget_bytes=12 * 1024 * 1024):
    """MLP forward: sigmoid(relu(x @ w1.T + b1) @ w2.T + b2).

    Weights use PyTorch nn.Linear layout: w1 (D_hid, D_in), b1 (D_hid,),
    w2 (D_out, D_hid), b2 (D_out,). `mxu_dtype` is the matmul-operand dtype
    (bf16 recommended on all TPU generations); accumulation is always f32.
    """
    B, D_in = x.shape
    D_hid = w1.shape[0]
    D_out = w2.shape[0]
    mxu_dtype = jnp.dtype(mxu_dtype)
    mxu_bytes = mxu_dtype.itemsize

    # ---- Pad feature dims to lane-dense 128 multiples.
    # Zero padding is exact: padded input lanes contribute 0 to the first
    # contraction; padded hidden units get bias 0 -> ReLU(0)=0 -> contribute 0
    # to the second contraction; padded output columns are sliced off below.
    Dp_in = _round_up(D_in, LANE)
    Dp_hid = _round_up(D_hid, LANE)
    Dp_out = _round_up(D_out, LANE)

    # ---- VMEM-aware batch tile, then pad the batch to a whole number of
    # tiles so every grid step stores a full, unmasked block.
    Bp0 = _round_up(max(B, SUBLANE), SUBLANE)
    if tile_b is None:
        tile_b = _choose_tile_b(Bp0, Dp_in, Dp_hid, Dp_out, mxu_bytes,
                                vmem_budget_bytes)
    tile_b = max(SUBLANE, _round_up(min(int(tile_b), Bp0), SUBLANE))
    Bp = _round_up(Bp0, tile_b)
    grid = (Bp // tile_b,)

    x_p = jnp.zeros((Bp, Dp_in), mxu_dtype).at[:B, :D_in].set(x.astype(mxu_dtype))
    w1_p = jnp.zeros((Dp_in, Dp_hid), mxu_dtype).at[:D_in, :D_hid].set(
        w1.T.astype(mxu_dtype))
    w2_p = jnp.zeros((Dp_hid, Dp_out), mxu_dtype).at[:D_hid, :D_out].set(
        w2.T.astype(mxu_dtype))
    b1_p = jnp.zeros((1, Dp_hid), jnp.float32).at[0, :D_hid].set(
        b1.astype(jnp.float32))
    b2_p = jnp.zeros((1, Dp_out), jnp.float32).at[0, :D_out].set(
        b2.astype(jnp.float32))

    # ---- Advisory cost estimate for the XLA scheduler.
    flops = 2 * Bp * Dp_in * Dp_hid + 2 * Bp * Dp_hid * Dp_out
    bytes_accessed = ((Bp * Dp_in + Dp_in * Dp_hid + Dp_hid * Dp_out) * mxu_bytes
                      + (Dp_hid + Dp_out) * 4 + Bp * Dp_out * 4)

    out_p = pl.pallas_call(
        mlp_kernel,
        out_shape=jax.ShapeDtypeStruct((Bp, Dp_out), jnp.float32),
        grid_spec=pltpu.PrefetchScalarGridSpec(
            num_scalar_prefetch=0,
            grid=grid,
            in_specs=[
                pl.BlockSpec((tile_b, Dp_in), lambda i: (i, 0)),    # x tile
                pl.BlockSpec((Dp_in, Dp_hid), lambda i: (0, 0)),    # W1^T (resident)
                pl.BlockSpec((1, Dp_hid), lambda i: (0, 0)),        # b1
                pl.BlockSpec((Dp_hid, Dp_out), lambda i: (0, 0)),   # W2^T (resident)
                pl.BlockSpec((1, Dp_out), lambda i: (0, 0)),        # b2
            ],
            out_specs=pl.BlockSpec((tile_b, Dp_out), lambda i: (i, 0)),
        ),
        compiler_params=pltpu.CompilerParams(
            dimension_semantics=("parallel",)),
        cost_estimate=pl.CostEstimate(
            flops=flops,
            transcendentals=Bp * Dp_out,
            bytes_accessed=bytes_accessed),
    )(x_p, w1_p, b1_p, w2_p, b2_p)

    return out_p[:B, :D_out].astype(x.dtype)


def reference_forward(x, w1, b1, w2, b2):
    h = jnp.maximum(x @ w1.T + b1, 0.0)
    return jax.nn.sigmoid(h @ w2.T + b2)


if __name__ == "__main__":
    # Small shapes consistent with the module: MLP(input_size=32, output_size=16).
    B, D_in, D_out = 64, 32, 16
    key = jax.random.PRNGKey(0)
    kx, k1, k2, k3, k4 = jax.random.split(key, 5)

    x = jax.random.normal(kx, (B, D_in), dtype=jnp.float32)

    # Deterministic init mimicking nn.Linear's U(-1/sqrt(fan_in), 1/sqrt(fan_in)),
    # PyTorch layout: weight (out_features, in_features), bias (out_features,).
    bound1 = 1.0 / np.sqrt(D_in)
    w1 = jax.random.uniform(k1, (D_in, D_in), jnp.float32, -bound1, bound1)
    b1 = jax.random.uniform(k2, (D_in,), jnp.float32, -bound1, bound1)
    bound2 = 1.0 / np.sqrt(D_in)
    w2 = jax.random.uniform(k3, (D_out, D_in), jnp.float32, -bound2, bound2)
    b2 = jax.random.uniform(k4, (D_out,), jnp.float32, -bound2, bound2)

    ref = reference_forward(x, w1, b1, w2, b2)

    # f32 MXU operands: tight check against the reference.
    out_f32 = jax.block_until_ready(
        mlp_forward(x, w1, b1, w2, b2, mxu_dtype=jnp.float32))
    np.testing.assert_allclose(np.asarray(out_f32), np.asarray(ref),
                               rtol=1e-5, atol=1e-5)

    # Default bf16 MXU operands (f32 accumulation): looser tolerance.
    out_bf16 = jax.block_until_ready(mlp_forward(x, w1, b1, w2, b2))
    np.testing.assert_allclose(np.asarray(out_bf16), np.asarray(ref),
                               rtol=0.0, atol=2e-2)

    print("KERNEL_OK")
</pallas_src>

<mosaic_0001>
module attributes {stable_mosaic.version = 11 : i64} {
  func.func @mlp_kernel(%arg0: i32, %arg1: memref<32x128xf32, #tpu.memory_space<vmem>>, %arg2: memref<128x128xf32, #tpu.memory_space<vmem>>, %arg3: memref<1x128xf32, #tpu.memory_space<vmem>>, %arg4: memref<128x128xf32, #tpu.memory_space<vmem>>, %arg5: memref<1x128xf32, #tpu.memory_space<vmem>>, %arg6: memref<32x128xf32, #tpu.memory_space<vmem>>) attributes {dimension_semantics = [#tpu.dimension_semantics<parallel>], iteration_bounds = array<i64: 2>, scalar_prefetch = 0 : i64, scratch_operands = 0 : i64, tpu.core_type = #tpu.core_type<tc>, window_params = [{transform_indices = @transform_0, window_bounds = array<i64: 32, 128>}, {pipeline_mode = #tpu.pipeline_mode<synchronous>, transform_indices = @transform_1, window_bounds = array<i64: 128, 128>}, {pipeline_mode = #tpu.pipeline_mode<synchronous>, transform_indices = @transform_2, window_bounds = array<i64: 1, 128>}, {pipeline_mode = #tpu.pipeline_mode<synchronous>, transform_indices = @transform_3, window_bounds = array<i64: 128, 128>}, {pipeline_mode = #tpu.pipeline_mode<synchronous>, transform_indices = @transform_4, window_bounds = array<i64: 1, 128>}, {transform_indices = @transform_5, window_bounds = array<i64: 32, 128>}]} {
    %c0 = arith.constant 0 : index
    %c0_0 = arith.constant 0 : index
    %0 = vector.load %arg1[%c0, %c0_0] : memref<32x128xf32, #tpu.memory_space<vmem>>, vector<32x128xf32>
    %c0_1 = arith.constant 0 : index
    %c0_2 = arith.constant 0 : index
    %1 = vector.load %arg2[%c0_1, %c0_2] : memref<128x128xf32, #tpu.memory_space<vmem>>, vector<128x128xf32>
    %cst = arith.constant dense<0.000000e+00> : vector<32x128xf32>
    %2 = tpu.matmul %0, %1, %cst {dimension_numbers = #tpu.dot_dimension_numbers<[1], [0], [0], [1], [0, 0, 1, 1], [], []>} : vector<32x128xf32>, vector<128x128xf32>, vector<32x128xf32> -> vector<32x128xf32>
    %c0_3 = arith.constant 0 : index
    %c0_4 = arith.constant 0 : index
    %3 = vector.load %arg3[%c0_3, %c0_4] : memref<1x128xf32, #tpu.memory_space<vmem>>, vector<1x128xf32>
    %4 = vector.broadcast %3 : vector<1x128xf32> to vector<32x128xf32>
    %5 = arith.addf %2, %4 : vector<32x128xf32>
    %cst_5 = arith.constant 0.000000e+00 : f32
    %6 = vector.broadcast %cst_5 : f32 to vector<32x128xf32>
    %7 = arith.maximumf %5, %6 : vector<32x128xf32>
    %c0_6 = arith.constant 0 : index
    %c0_7 = arith.constant 0 : index
    %8 = vector.load %arg4[%c0_6, %c0_7] : memref<128x128xf32, #tpu.memory_space<vmem>>, vector<128x128xf32>
    %cst_8 = arith.constant dense<0.000000e+00> : vector<32x128xf32>
    %9 = tpu.matmul %7, %8, %cst_8 {dimension_numbers = #tpu.dot_dimension_numbers<[1], [0], [0], [1], [0, 0, 1, 1], [], []>} : vector<32x128xf32>, vector<128x128xf32>, vector<32x128xf32> -> vector<32x128xf32>
    %c0_9 = arith.constant 0 : index
    %c0_10 = arith.constant 0 : index
    %10 = vector.load %arg5[%c0_9, %c0_10] : memref<1x128xf32, #tpu.memory_space<vmem>>, vector<1x128xf32>
    %11 = vector.broadcast %10 : vector<1x128xf32> to vector<32x128xf32>
    %12 = arith.addf %9, %11 : vector<32x128xf32>
    %13 = arith.negf %12 : vector<32x128xf32>
    %14 = math.exp %13 : vector<32x128xf32>
    %cst_11 = arith.constant 1.000000e+00 : f32
    %15 = vector.broadcast %cst_11 : f32 to vector<32x128xf32>
    %16 = arith.addf %15, %14 : vector<32x128xf32>
    %17 = arith.divf %15, %16 : vector<32x128xf32>
    %c0_12 = arith.constant 0 : index
    %c0_13 = arith.constant 0 : index
    %18 = vector.load %arg6[%c0_12, %c0_13] : memref<32x128xf32, #tpu.memory_space<vmem>>, vector<32x128xf32>
    tpu.vector_store %arg6[%c0_12, %c0_13], %17 {strides = array<i32>} : memref<32x128xf32, #tpu.memory_space<vmem>>, vector<32x128xf32>,
    return
  }
  func.func @transform_0(%arg0: i32) -> (i32, i32) {
    %c0_i32 = arith.constant 0 : i32
    %c0_i32_0 = arith.constant 0 : i32
    return %arg0, %c0_i32 : i32, i32
  }
  func.func @transform_1(%arg0: i32) -> (i32, i32) {
    %c0_i32 = arith.constant 0 : i32
    %c0_i32_0 = arith.constant 0 : i32
    %c0_i32_1 = arith.constant 0 : i32
    return %c0_i32, %c0_i32_0 : i32, i32
  }
  func.func @transform_2(%arg0: i32) -> (i32, i32) {
    %c0_i32 = arith.constant 0 : i32
    %c0_i32_0 = arith.constant 0 : i32
    %c0_i32_1 = arith.constant 0 : i32
    return %c0_i32, %c0_i32_0 : i32, i32
  }
  func.func @transform_3(%arg0: i32) -> (i32, i32) {
    %c0_i32 = arith.constant 0 : i32
    %c0_i32_0 = arith.constant 0 : i32
    %c0_i32_1 = arith.constant 0 : i32
    return %c0_i32, %c0_i32_0 : i32, i32
  }
  func.func @transform_4(%arg0: i32) -> (i32, i32) {
    %c0_i32 = arith.constant 0 : i32
    %c0_i32_0 = arith.constant 0 : i32
    %c0_i32_1 = arith.constant 0 : i32
    return %c0_i32, %c0_i32_0 : i32, i32
  }
  func.func @transform_5(%arg0: i32) -> (i32, i32) {
    %c0_i32 = arith.constant 0 : i32
    %c0_i32_0 = arith.constant 0 : i32
    return %arg0, %c0_i32 : i32, i32
  }
}

</mosaic_0001>

<bundles_post_ra>
// kernel: tpu_custom_call.1
= control target key start
LH: loop header
LB: loop body
LE: loop exit
PB: predicated region body
PF: predicated region fallthrough
CT: control target
= control target key end

     0   :  { %10 = vsyncpa [#allocation3], 0  ;;  %s1090_s0 = inlined_call_operand.hbm [shape: f32[64,128], index: 0, kind: input, shape index: {}]   ;;  %s1091_s1 = inlined_call_operand.hbm [shape: f32[128,128], index: 1, kind: input, shape index: {}]   ;;  %s1092_s2 = inlined_call_operand.vmem [shape: f32[1,128], index: 2, kind: input, shape index: {}]   ;;  %s1093_s3 = inlined_call_operand.hbm [shape: f32[128,128], index: 3, kind: input, shape index: {}]   ;;  %s1094_s4 = inlined_call_operand.vmem [shape: f32[1,128], index: 4, kind: input, shape index: {}]   ;;  %s1095_s5 = inlined_call_operand.hbm [shape: f32[64,128], index: 5, kind: output, shape index: {}]  }
   0x1   :  { %12 = vsyncpa [#allocation3 + $0x1], 0 }
   0x2   :  { %13 = vsyncpa [#allocation6], 0 }
   0x3   :  { %14 = vsyncpa [#allocation4], 0 }
   0x4   :  { %16 = vsyncpa [#allocation4 + $0x1], 0  ;;  %s917_s18 = smov 0   ;;  %s919_s19 = smov 0  }
   0x5   :  { %s921_s20 = smov 0   ;;  %s923_s21 = smov 0  }
   0x6 LB: > { %s938_s22 = sadd.s32 4294967295, %s879_s21   ;;  %s574_s23 = sadd.s32 4294967294, %s879_s21   ;;  %s879_s21 = sphi %s923_s21, %s1107_s21   ;;  %s875_s20 = sphi %s921_s20, %s1106_s20   ;;  %s871_s19 = sphi %s919_s19, %s1105_s19   ;;  %s867_s18 = sphi %s917_s18, %s1104_s18  }
   0x7   : > { %p42_p0 = scmp.ne.s32.totalorder %s871_s19, %s867_s18  ;;  %p43_p1 = scmp.eq.s32.totalorder %s938_s22, 0 }
   0x8   : > { %p150_p2 = scmp.eq.s32.totalorder %s938_s22, 1  ;;  %p156_p3 = scmp.eq.s32.totalorder %s574_s23, 1 }
   0x9   : > { %p947_p4 = por %p43_p1, %p42_p0  ;;  %p575_p5 = scmp.ge.s32.totalorder %s879_s21, 1 }
   0xa   : > { %p952_p6 = por %p156_p3, %p42_p0  ;;  %p163_p7 = scmp.lt.s32.totalorder %s879_s21, 3 }
   0xb   : > { %s174_s28 = sshll.u32 %s1091_s1, 4  ;;  %s881_s30 = smov [#allocation5]   ;;  %s175_s28 = int_to_ptr.hbm [resolvable:$true] %s174_s28 }
   0xc   : > { %p960_p8 = pnand %p575_p5, %p163_p7  ;;  %s176_s6 = sshll.u32 %s881_s30, 4  ;;  %s177_s6 = int_to_ptr.vmem [resolvable:$true] %s176_s6 }
   0xd   : > { %s191_s9 = sshll.u32 %s1093_s3, 4  ;;  %s1096_s10 = smov 128   ;;  %s192_s9 = int_to_ptr.hbm [resolvable:$true] %s191_s9 }
   0xe   : > { %p642_p9 = pneg %p960_p8  ;;  %s883_s11 = smov 8  }
   0xf   : > { %s884_s12 = smov [#allocation7]   ;;  %s979_s14 = sadd.s32 1, %s879_s21  }
  0x10   : > { %p643_p10 = pnand %p642_p9, %p43_p1  ;;  %s193_s13 = sshll.u32 %s884_s12, 4  ;;  %s194_s13 = int_to_ptr.vmem [resolvable:$true] %s193_s13 }
  0x11   : > { %s29_s15 = sadd.s32 1, %s875_s20  ;;  %s26_s16 = ssub.s32 %s879_s21, %s979_s14 }
  0x12   : > { %645 = dma.hbm_to_vmem [thread:$0]  (!%p643_p10), %s175_s28, 2048, %s177_s6, [#allocation6], %s1096_s10, %s1096_s10, %s883_s11  }
  0x13   : > { %648 = dma.hbm_to_vmem [thread:$0]  (!%p643_p10), %s192_s9, 2048, %s194_s13, [#allocation6], %s1096_s10, %s1096_s10, %s883_s11  }
  0x14   : > { %p36_p12 = scmp.ne.s32.totalorder %s875_s20, %s871_s19  ;;  %p27_p13 = scmp.eq.s32.totalorder %s26_s16, 0 }
  0x15   : > { %p37_p0 = scmp.eq.s32.totalorder %s879_s21, 0  ;;  %p659_p5 = scmp.lt.s32.totalorder %s879_s21, 2 }
  0x16   : > { %p989_p3 = por %p150_p2, %p36_p12  ;;  %s210_s26 = sand.u32 1, %s875_s20  }
  0x17   : > { %s995_s23 = scalar_select %p27_p13, %s875_s20, %s29_s15  }
  0x18   : > { %p38_p7 = por %p37_p0, %p36_p12  ;;  %s579_s27 = sshll.u32 %s210_s26, 5 }
  0x19   : > { %s596_s28 = sshll.u32 %s879_s21, 5  ;;  %s214_s8 = scalar_lea.vmem [#allocation2], %s579_s27 }
  0x1a   : > { %s219_s7 = scalar_lea.hbm %s1090_s0, %s596_s28  ;;  %s222_s9 = sshll.u32 %s214_s8, 4  ;;  %s223_s9 = int_to_ptr.vmem [resolvable:$true] %s222_s9 }
  0x1b   : > { %s220_s12 = sshll.u32 %s219_s7, 4  ;;  %p1002_p2 = pnand %p659_p5, %p38_p7  ;;  %s221_s12 = int_to_ptr.hbm [resolvable:$true] %s220_s12 }
  0x1c   : > { %s211_s15 = scalar_lea.sflag [#allocation3], %s210_s26  ;;  %s779_s16 = sshra.s32 %s221_s12, 4  ;;  %s780_s16 = int_to_ptr.hbm [resolvable:$true] %s779_s16 }
  0x1d   : > { %s781_s10 = scalar_lea.hbm %s780_s16, 32  ;;  %p783_p10 = pneg %p1002_p2 }
  0x1e   : > { %p782_p9 = scmp.ne.s32.totalorder %s780_s16, %s781_s10  ;;  %s786_s30 = scalar_lea.hbm %s1090_s0, 64 }
  0x1f   : > { %p787_p0 = scmp.lt.s32.totalorder %s780_s16, %s1090_s0  ;;  %p788_p5 = scmp.lt.s32.totalorder %s786_s30, %s781_s10 }
  0x20   : > { %p784_p12 = pnand %p783_p10, %p782_p9 }
  0x21   : > { %p789_p7 = por %p788_p5, %p787_p0 }
  0x22   : > { %p785_p13 = pneg %p784_p12 }
  0x24   : > { %p790_p11 = pnand %p789_p7, %p785_p13 }
  0x26   : > { %793 = shalt.err (!%p790_p11)
}
  0x27   : > { %s1102_s26 = smov 128   ;;  %234 = sbr.rel (%p960_p8) target bundleno = 389 (0x185), region = 40 }
  0x28   : > { %652 = dma.hbm_to_vmem [thread:$0]  (!%p1002_p2), %s221_s12, 512, %s223_s9, %s211_s15, %s1102_s26, %s1102_s26, %s883_s11  }
  0x29   : > { %s1022_s8 = sand.u32 (!%p960_p8), 1, %s871_s19  }
  0x2a   : > { %s583_s10 = sshll.u32 (!%p960_p8), %s1022_s8, 5  ;;  %s237_s16 = scalar_lea.sflag (!%p960_p8), [#allocation3], %s1022_s8 }
  0x2b   : > { %s1028_s28 = scalar_lea.vmem (!%p960_p8), [#allocation2], %s583_s10 }
  0x2c   : > { %854 = dma.done.wait (%p947_p4), %s237_s16, 512  }
  0x2d   : > { %856 = vsyncadd (%p947_p4), %s237_s16, 4294966784 }
  0x2e   : > { %858 = dma.done.wait (%p43_p1), [#allocation6], 4096  }
  0x2f   : > { %860 = vsyncadd (%p43_p1), [#allocation6], 4294963200  ;;  %v299_v0 = vld [vmem:[#allocation5 + $0x78] sm:$0xff]  ;;  %v298_v1 = vld [vmem:[#allocation5 + $0x70] sm:$0xff]  ;;  %s1050_s12 = scalar_lea.vmem [#allocation8], %s583_s10  ;;  %s597_s13 = sshll.u32 %s938_s22, 5 }
  0x30   : > { %304 = vmatpush.msra.mxu0 %v299_v0  ;;  %598 = vmatpush.msra.mxu2 %v299_v0  ;;  %v297_v2 = vld [vmem:[#allocation5 + $0x68] sm:$0xff]  ;;  %v296_v3 = vld [vmem:[#allocation5 + $0x60] sm:$0xff]  ;;  %v295_v4 = vld [vmem:[#allocation5 + $0x58] sm:$0xff]  ;;  %s478_s30 = scalar_lea.hbm %s1095_s5, %s597_s13  ;;  %s479_s22 = sshll.u32 %s1050_s12, 4  ;;  %s480_s22 = int_to_ptr.vmem [resolvable:$true] %s479_s22 }
  0x31   : > { %v294_v5 = vld [vmem:[#allocation5 + $0x50] sm:$0xff]  ;;  %v352_v6 = vld [vmem:[#allocation7 + $0x78] sm:$0xff]  ;;  %v293_v8 = vld [vmem:[#allocation5 + $0x48] sm:$0xff]  ;;  %s481_s6 = sshll.u32 %s478_s30, 4  ;;  %s467_s7 = scalar_lea.sflag [#allocation4], %s1022_s8  ;;  %s482_s6 = int_to_ptr.hbm [resolvable:$true] %s481_s6 }
  0x32   : > { %305 = vmatpush.msra.mxu0 %v298_v1  ;;  %599 = vmatpush.msra.mxu2 %v298_v1  ;;  %v351_v7 = vld [vmem:[#allocation7 + $0x70] sm:$0xff]  ;;  %v350_v9 = vld [vmem:[#allocation7 + $0x68] sm:$0xff]  ;;  %v292_v10 = vld [vmem:[#allocation5 + $0x40] sm:$0xff]  ;;  %s823_s26 = sshra.s32 %s482_s6, 4  ;;  %s829_s24 = scalar_lea.hbm %s1095_s5, 64  ;;  %s824_s26 = int_to_ptr.hbm [resolvable:$true] %s823_s26 }
  0x33   : > { %357 = vmatpush.msra.mxu1 %v352_v6  ;;  %614 = vmatpush.msra.mxu3 %v352_v6  ;;  %v349_v11 = vld [vmem:[#allocation7 + $0x60] sm:$0xff]  ;;  %v291_v12 = vld [vmem:[#allocation5 + $0x38] sm:$0xff]  ;;  %v290_v14 = vld [vmem:[#allocation5 + $0x30] sm:$0xff]  ;;  %s825_s10 = scalar_lea.hbm %s824_s26, 32  ;;  %p830_p11 = scmp.lt.s32.totalorder %s824_s26, %s1095_s5 }
  0x34   : > { %306 = vmatpush.msra.mxu0 %v297_v2  ;;  %600 = vmatpush.msra.mxu2 %v297_v2  ;;  %v348_v13 = vld [vmem:[#allocation7 + $0x58] sm:$0xff]  ;;  %v347_v15 = vld [vmem:[#allocation7 + $0x50] sm:$0xff]  ;;  %v289_v16 = vld [vmem:[#allocation5 + $0x28] sm:$0xff]  ;;  %p826_p1 = scmp.ne.s32.totalorder %s824_s26, %s825_s10  ;;  %p831_p2 = scmp.lt.s32.totalorder %s829_s24, %s825_s10 }
  0x35   : > { %358 = vmatpush.msra.mxu1 %v351_v7  ;;  %615 = vmatpush.msra.mxu3 %v351_v7  ;;  %v346_v17 = vld [vmem:[#allocation7 + $0x48] sm:$0xff]  ;;  %v288_v18 = vld [vmem:[#allocation5 + $0x20] sm:$0xff]  ;;  %v287_v20 = vld [vmem:[#allocation5 + $0x18] sm:$0xff] }
  0x36   : > { %307 = vmatpush.msra.mxu0 %v296_v3  ;;  %601 = vmatpush.msra.mxu2 %v296_v3  ;;  %v345_v19 = vld [vmem:[#allocation7 + $0x40] sm:$0xff]  ;;  %v344_v21 = vld [vmem:[#allocation7 + $0x38] sm:$0xff]  ;;  %v286_v22 = vld [vmem:[#allocation5 + $0x10] sm:$0xff]  ;;  %p827_p4 = pnand %p826_p1, %p989_p3  ;;  %p832_p9 = por %p831_p2, %p830_p11 }
  0x37   : > { %359 = vmatpush.msra.mxu1 %v350_v9  ;;  %616 = vmatpush.msra.mxu3 %v350_v9  ;;  %v343_v23 = vld [vmem:[#allocation7 + $0x30] sm:$0xff]  ;;  %v285_v24 = vld [vmem:[#allocation5 + $0x8] sm:$0xff]  ;;  %v284_v26 = vld [vmem:[#allocation5] sm:$0xff] }
  0x38   : > { %308 = vmatpush.msra.mxu0 %v295_v4  ;;  %602 = vmatpush.msra.mxu2 %v295_v4  ;;  %v342_v25 = vld [vmem:[#allocation7 + $0x28] sm:$0xff]  ;;  %v280_v27 = vld [vmem:[%s1028_s28] sm:$0xff]  ;;  %v282_v28 = vld [vmem:[%s1028_s28 + $0x10] sm:$0xff]  ;;  %p828_p8 = pneg %p827_p4 }
  0x39   : > { %360 = vmatpush.msra.mxu1 %v349_v11  ;;  %617 = vmatpush.msra.mxu3 %v349_v11  ;;  %v341_v29 = vld [vmem:[#allocation7 + $0x20] sm:$0xff]  ;;  %v340_v30 = vld [vmem:[#allocation7 + $0x18] sm:$0xff]  ;;  %v281_v31 = vld [vmem:[%s1028_s28 + $0x8] sm:$0xff] }
  0x3a   : > { %309 = vmatpush.msra.mxu0 %v294_v5  ;;  %603 = vmatpush.msra.mxu2 %v294_v5  ;;  %v283_v32 = vld [vmem:[%s1028_s28 + $0x18] sm:$0xff]  ;;  %v339_v33 = vld [vmem:[#allocation7 + $0x10] sm:$0xff]  ;;  %v338_v34 = vld [vmem:[#allocation7 + $0x8] sm:$0xff]  ;;  %p833_p10 = pnand %p832_p9, %p828_p8 }
  0x3b   : > { %361 = vmatpush.msra.mxu1 %v348_v13  ;;  %618 = vmatpush.msra.mxu3 %v348_v13  ;;  %v337_v35 = vld [vmem:[#allocation7] sm:$0xff] }
  0x3c   : > { %310 = vmatpush.msra.mxu0 %v293_v8  ;;  %604 = vmatpush.msra.mxu2 %v293_v8  ;;  %v701_v36 = vld [vmem:[%s1092_s2] ss:$0 sm:$0xff] }
  0x3d   : > { %362 = vmatpush.msra.mxu1 %v347_v15  ;;  %619 = vmatpush.msra.mxu3 %v347_v15  ;;  %v702_v49 = vld [vmem:[%s1094_s4] ss:$0 sm:$0xff] }
  0x3e   : > { %311 = vmatpush.msra.mxu0 %v292_v10  ;;  %605 = vmatpush.msra.mxu2 %v292_v10 }
  0x3f   : > { %363 = vmatpush.msra.mxu1 %v346_v17  ;;  %620 = vmatpush.msra.mxu3 %v346_v17 }
  0x40   : > { %312 = vmatpush.msra.mxu0 %v291_v12  ;;  %606 = vmatpush.msra.mxu2 %v291_v12 }
  0x41   : > { %364 = vmatpush.msra.mxu1 %v345_v19  ;;  %621 = vmatpush.msra.mxu3 %v345_v19 }
  0x42   : > { %313 = vmatpush.msra.mxu0 %v290_v14  ;;  %607 = vmatpush.msra.mxu2 %v290_v14 }
  0x43   : > { %365 = vmatpush.msra.mxu1 %v344_v21  ;;  %622 = vmatpush.msra.mxu3 %v344_v21 }
  0x44   : > { %314 = vmatpush.msra.mxu0 %v289_v16  ;;  %608 = vmatpush.msra.mxu2 %v289_v16 }
  0x45   : > { %366 = vmatpush.msra.mxu1 %v343_v23  ;;  %623 = vmatpush.msra.mxu3 %v343_v23 }
  0x46   : > { %315 = vmatpush.msra.mxu0 %v288_v18  ;;  %609 = vmatpush.msra.mxu2 %v288_v18 }
  0x47   : > { %367 = vmatpush.msra.mxu1 %v342_v25  ;;  %624 = vmatpush.msra.mxu3 %v342_v25 }
  0x48   : > { %316 = vmatpush.msra.mxu0 %v287_v20  ;;  %610 = vmatpush.msra.mxu2 %v287_v20 }
  0x49   : > { %368 = vmatpush.msra.mxu1 %v341_v29  ;;  %625 = vmatpush.msra.mxu3 %v341_v29 }
  0x4a   : > { %317 = vmatpush.msra.mxu0 %v286_v22  ;;  %611 = vmatpush.msra.mxu2 %v286_v22 }
  0x4b   : > { %369 = vmatpush.msra.mxu1 %v340_v30  ;;  %626 = vmatpush.msra.mxu3 %v340_v30 }
  0x4c   : > { %318 = vmatpush.msra.mxu0 %v285_v24  ;;  %612 = vmatpush.msra.mxu2 %v285_v24 }
  0x4d   : > { %370 = vmatpush.msra.mxu1 %v339_v33  ;;  %627 = vmatpush.msra.mxu3 %v339_v33 }
  0x4e   : > { %319 = vmatpush.msra.mxu0 %v284_v26  ;;  %613 = vmatpush.msra.mxu2 %v284_v26 }
  0x4f   : > { %320 = vmatmul.f32.vlgmr.msra.gmra.mxu0 %v280_v27  ;;  %326 = vmatmul.f32.vlgmr.msra.gmra.mxu2 %v282_v28 }
  0x50   : > { %371 = vmatpush.msra.mxu1 %v338_v34  ;;  %628 = vmatpush.msra.mxu3 %v338_v34 }
  0x52   : > { %372 = vmatpush.msra.mxu1 %v337_v35  ;;  %629 = vmatpush.msra.mxu3 %v337_v35 }
  0x57   : > { %323 = vmatmul.f32.gmra.mxu0 %v281_v31  ;;  %329 = vmatmul.f32.gmra.mxu2 %v283_v32 }
  0xcc   : > { %v321_v37 = vpop.f32.mrf.mxu0 }
  0xcd   : > { %v322_v38 = vadd.f32 %v701_v36, %v321_v37 }
  0xcf   : > { %v333_v39 = vmax.f32 %v322_v38, 0.0 }
  0xd1   : > { %373 = vmatmul.f32.vlgmr.msra.gmra.mxu1 %v333_v39 }
  0xd2   : > { %v327_v40 = vpop.f32.mrf.mxu2 }
  0xd3   : > { %v328_v41 = vadd.f32 %v701_v36, %v327_v40 }
  0xd4   : > { %v324_v42 = vpop.f32.mrf.mxu0 }
  0xd5   : > { %v335_v43 = vmax.f32 %v328_v41, 0.0  ;;  %v325_v44 = vadd.f32 %v701_v36, %v324_v42 }
  0xd7   : > { %v334_v45 = vmax.f32 %v325_v44, 0.0  ;;  %379 = vmatmul.f32.vlgmr.msra.gmra.mxu3 %v335_v43 }
  0xd9   : > { %376 = vmatmul.f32.gmra.mxu1 %v334_v45 }
  0xda   : > { %v330_v46 = vpop.f32.mrf.mxu2 }
  0xdb   : > { %v331_v47 = vadd.f32 %v701_v36, %v330_v46 }
  0xdd   : > { %v336_v48 = vmax.f32 %v331_v47, 0.0 }
  0xdf   : > { %382 = vmatmul.f32.gmra.mxu3 %v336_v48 }
 0x14e   : > { %v374_v50 = vpop.f32.mrf.mxu1 }
 0x14f   : > { %v375_v51 = vadd.f32 %v702_v49, %v374_v50 }
 0x151   : > { %v587_v52 = vmul.f32 -1.442695, %v375_v51 }
 0x153   : > { %703 = vpow2.f32 %v587_v52 }
 0x156   : > { %v377_v53 = vpop.f32.mrf.mxu1 }
 0x157   : > { %v378_v54 = vadd.f32 %v702_v49, %v377_v53 }
 0x159   : > { %v704_v55 = vpop.eup %703  ;;  %v588_v56 = vmul.f32 -1.442695, %v378_v54 }
 0x15a   : > { %v398_v57 = vadd.f32 1.0, %v704_v55  ;;  %v380_v58 = vpop.f32.mrf.mxu3 }
 0x15b   : > { %705 = vpow2.f32 %v588_v56  ;;  %v381_v59 = vadd.f32 %v702_v49, %v380_v58 }
 0x15c   : > { %707 = vrcp.f32 %v398_v57  ;;  %vm407_vm0 = vweird.f32 %v398_v57  ;;  %v413_v3 = vand.u32 2147483648, %v398_v57  ;;  %v411_v6 = vand.u32 2147483647, %v398_v57 }
 0x15d   : > { %v589_v60 = vmul.f32 -1.442695, %v381_v59 }
 0x15e   : > { %v414_v10 = vor.u32 1.1754944e-38, %v413_v3  ;;  %vm412_vm3 = vcmp.eq.f32.partialorder %v411_v6, 8.507059e+37 }
 0x15f   : > { %709 = vpow2.f32 %v589_v60 }
 0x161   : > { %v706_v61 = vpop.eup %705 }
 0x162   : > { %v708_v62 = vpop.eup %707  ;;  %v399_v63 = vadd.f32 1.0, %v706_v61  ;;  %v383_v0 = vpop.f32.mrf.mxu3 }
 0x163   : > { %v403_v1 = vmul.f32 %v708_v62, %v398_v57  ;;  %v384_v2 = vadd.f32 %v702_v49, %v383_v0  ;;  %vm408_vm1 = vweird.f32 %v708_v62 }
 0x164   : > { %711 = vrcp.f32 %v399_v63  ;;  %vm409_vm2 = vmor %vm407_vm0, %vm408_vm1  ;;  %v428_v16 = vand.u32 2147483648, %v399_v63  ;;  %vm422_vm4 = vweird.f32 %v399_v63  ;;  %v426_v19 = vand.u32 2147483647, %v399_v63 }
 0x165   : > { %v710_v4 = vpop.eup %709  ;;  %v404_v5 = vsub.f32 1.0, %v403_v1  ;;  %v590_v7 = vmul.f32 -1.442695, %v384_v2 }
 0x166   : > { %v400_v8 = vadd.f32 1.0, %v710_v4  ;;  %v429_v24 = vor.u32 1.1754944e-38, %v428_v16  ;;  %vm427_vm7 = vcmp.eq.f32.partialorder %v426_v19, 8.507059e+37 }
 0x167   : > { %v405_v9 = vmul.f32 %v708_v62, %v404_v5  ;;  %713 = vpow2.f32 %v590_v7 }
 0x168   : > { %715 = vrcp.f32 %v400_v8  ;;  %v443_v27 = vand.u32 2147483648, %v400_v8  ;;  %v441_v30 = vand.u32 2147483647, %v400_v8  ;;  %vm437_vm9 = vweird.f32 %v400_v8 }
 0x169   : > { %v406_v11 = vadd.f32 %v708_v62, %v405_v9 }
 0x16a   : > { %v712_v12 = vpop.eup %711  ;;  %v444_v34 = vor.u32 1.1754944e-38, %v443_v27  ;;  %vm442_vm11 = vcmp.eq.f32.partialorder %v441_v30, 8.507059e+37 }
 0x16b   : > { %v410_v13 = vsel %vm409_vm2, %v708_v62, %v406_v11  ;;  %v418_v14 = vmul.f32 %v712_v12, %v399_v63  ;;  %vm423_vm5 = vweird.f32 %v712_v12 }
 0x16c   : > { %v415_v15 = vsel %vm412_vm3, %v414_v10, %v410_v13  ;;  %vm424_vm6 = vmor %vm422_vm4, %vm423_vm5 }
 0x16d   : > { %v714_v17 = vpop.eup %713  ;;  %462 = vst [vmem:[%s1050_s12] sm:$0xff] %v415_v15  ;;  %v419_v18 = vsub.f32 1.0, %v418_v14 }
 0x16e   : > { %v716_v20 = vpop.eup %715  ;;  %v401_v21 = vadd.f32 1.0, %v714_v17 }
 0x16f   : > { %v420_v22 = vmul.f32 %v712_v12, %v419_v18  ;;  %v433_v23 = vmul.f32 %v716_v20, %v400_v8  ;;  %vm438_vm8 = vweird.f32 %v716_v20 }
 0x170   : > { %717 = vrcp.f32 %v401_v21  ;;  %vm439_vm10 = vmor %vm437_vm9, %vm438_vm8  ;;  %v458_v39 = vand.u32 2147483648, %v401_v21  ;;  %v456_v41 = vand.u32 2147483647, %v401_v21  ;;  %vm452_vm13 = vweird.f32 %v401_v21 }
 0x171   : > { %v421_v25 = vadd.f32 %v712_v12, %v420_v22  ;;  %v434_v26 = vsub.f32 1.0, %v433_v23 }
 0x172   : > { %v459_v43 = vor.u32 1.1754944e-38, %v458_v39  ;;  %vm457_vm15 = vcmp.eq.f32.partialorder %v456_v41, 8.507059e+37 }
 0x173   : > { %v425_v28 = vsel %vm424_vm6, %v712_v12, %v421_v25  ;;  %v435_v29 = vmul.f32 %v716_v20, %v434_v26 }
 0x174   : > { %v430_v31 = vsel %vm427_vm7, %v429_v24, %v425_v28 }
 0x175   : > { %463 = vst [vmem:[%s1050_s12 + $0x8] sm:$0xff] %v430_v31  ;;  %v436_v32 = vadd.f32 %v716_v20, %v435_v29 }
 0x176   : > { %v718_v33 = vpop.eup %717 }
 0x177   : > { %v440_v35 = vsel %vm439_vm10, %v716_v20, %v436_v32  ;;  %v448_v36 = vmul.f32 %v718_v33, %v401_v21  ;;  %vm453_vm12 = vweird.f32 %v718_v33 }
 0x178   : > { %v445_v37 = vsel %vm442_vm11, %v444_v34, %v440_v35  ;;  %vm454_vm14 = vmor %vm452_vm13, %vm453_vm12 }
 0x179   : > { %464 = vst [vmem:[%s1050_s12 + $0x10] sm:$0xff] %v445_v37  ;;  %v449_v38 = vsub.f32 1.0, %v448_v36 }
 0x17b   : > { %v450_v40 = vmul.f32 %v718_v33, %v449_v38 }
 0x17d   : > { %v451_v42 = vadd.f32 %v718_v33, %v450_v40 }
 0x17f   : > { %v455_v44 = vsel %vm454_vm14, %v718_v33, %v451_v42 }
 0x180   : > { %v460_v45 = vsel %vm457_vm15, %v459_v43, %v455_v44 }
 0x181   : > { %465 = vst [vmem:[%s1050_s12 + $0x18] sm:$0xff] %v460_v45 }
 0x182   : > { %836 = shalt.err (!%p833_p10)
}
 0x183   : > { %s885_s8 = smov 128   ;;  %s886_s9 = smov 8  }
 0x184   : > { %640 = dma.vmem_to_hbm [thread:$0]  (%p989_p3), %s480_s22, 512, %s482_s6, %s467_s7, %s885_s8, %s885_s8, %s886_s9  }
 0x185 PF: > { %s496_s12 = sand.u32 1, %s867_s18   ;;  %p1103_p12 = scmp.ge.s32.totalorder %s879_s21, 2 }
 0x186   : > { %s497_s13 = scalar_lea.sflag [#allocation4], %s496_s12 }
 0x187   : > { %p654_p13 = pnand %p1103_p12, %p952_p6 }
 0x189   : > { %p655_p0 = pneg %p654_p13 }
 0x18b   : > { %862 = dma.done.wait (%p655_p0), %s497_s13, 512  }
 0x18c   : > { %864 = vsyncadd (%p655_p0), %s497_s13, 4294966784  ;;  %p19_p5 = scmp.ge.s32.totalorder %s979_s14, 4   ;;  %s1104_s18 = smov %s871_s19 }
 0x18d   : > { %s1105_s19 = smov %s875_s20  ;;  %s1106_s20 = smov %s995_s23 }
 0x18e   : > { %s1107_s21 = smov %s979_s14  ;;  %21 = sbr.rel (!%p19_p5) target bundleno = 6 (0x6), region = 93 }
 0x193   :  { %503 = vsyncpa [#allocation3], 1 }
 0x194   :  { %505 = vsyncpa [#allocation3 + $0x1], 1 }
 0x195   :  { %506 = vsyncpa [#allocation6], 1 }
 0x196   :  { %507 = vsyncpa [#allocation4], 1 }
 0x197   :  { %509 = vsyncpa [#allocation4 + $0x1], 1 }

</bundles_post_ra>
